<compile_context>
chip_gen: v7x
topology: tpu7x:2x2x1
jax: 0.10.0
libtpu: 0.0.40
codegen_flags: <defaults>
</compile_context>

<pallas_src>
import functools

import jax
import jax.numpy as jnp
from jax import lax
from jax.experimental import pallas as pl
from jax.experimental.pallas import tpu as pltpu


# ---------------------------------------------------------------------------
# Kernel: fused 3x3 conv (9 statically-shifted MXU matmuls over a halo'd,
# flattened phase image resident in VMEM) + folded-BN bias
# (+ residual add with in-kernel channel embedding) (+ ReLU).
# ---------------------------------------------------------------------------
def _conv3x3_kernel(w_ref, b_ref, x_ref, *rest, offsets, q_len, nb, cout,
                    has_shortcut, sc_row0, apply_relu):
    if has_shortcut:
        sc_ref, o_ref = rest
    else:
        (o_ref,) = rest

    for i in range(nb):                                  # images in this block
        acc = None
        for t, off in enumerate(offsets):                # 9 static taps
            xs = x_ref[i, :, off:off + q_len]            # (Cin, Q) bf16 window
            p = jnp.dot(w_ref[t], xs, preferred_element_type=jnp.float32)
            acc = p if acc is None else acc + p
        y = acc + b_ref[...]                             # folded BN bias (Cout,1)
        if has_shortcut:
            sc = sc_ref[i, :, :].astype(jnp.float32)     # (Csc, Q), unpadded
            csc = sc.shape[0]
            if sc_row0 > 0 or csc < cout:
                parts = []
                if sc_row0 > 0:
                    parts.append(jnp.zeros((sc_row0, q_len), jnp.float32))
                parts.append(sc)
                tail = cout - sc_row0 - csc
                if tail > 0:
                    parts.append(jnp.zeros((tail, q_len), jnp.float32))
                sc = jnp.concatenate(parts, axis=0)      # embed into Cout rows
            y = y + sc
        if apply_relu:
            y = jnp.maximum(y, 0.0)
        o_ref[i, :, :] = y.astype(o_ref.dtype)


def _pick_batch_block(n, max_nb=8):
    """Largest divisor of n (<= max_nb) that still leaves >=2 grid steps."""
    best = 1
    for nb in range(1, min(n, max_nb) + 1):
        if n % nb == 0 and (n // nb >= 2 or n == 1):
            best = nb
    return best


def _conv3x3_bn_act(x_phase, offsets, q_len, w_taps, bias, *, shortcut=None,
                    sc_row0=0, apply_relu=True, out_dtype=jnp.float32):
    """One fused conv+BN(+shortcut)(+ReLU) pallas_call.

    x_phase : (N, Cin, L)    halo'd/phase image per batch element (bf16)
    w_taps  : (9, Cout, Cin) per-tap weights with BN scale folded in (bf16)
    bias    : (Cout, 1)      folded BN bias (f32)
    shortcut: (N, Csc, Q)    optional residual in the output layout (bf16)
    returns : (N, Cout, Q)   output in the "garbage-column" row layout
    """
    n, c, l = x_phase.shape
    cout = w_taps.shape[1]
    nb = _pick_batch_block(n)
    grid = (n // nb,)

    in_specs = [
        pl.BlockSpec((9, cout, c), lambda i: (0, 0, 0)),    # weights (resident)
        pl.BlockSpec((cout, 1), lambda i: (0, 0)),          # folded BN bias
        pl.BlockSpec((nb, c, l), lambda i: (i, 0, 0)),      # phase image(s)
    ]
    args = [w_taps, bias, x_phase]
    if shortcut is not None:
        csc = shortcut.shape[1]
        in_specs.append(pl.BlockSpec((nb, csc, q_len), lambda i: (i, 0, 0)))
        args.append(shortcut)

    kernel = functools.partial(
        _conv3x3_kernel, offsets=tuple(offsets), q_len=q_len, nb=nb, cout=cout,
        has_shortcut=shortcut is not None, sc_row0=sc_row0,
        apply_relu=apply_relu)

    return pl.pallas_call(
        kernel,
        out_shape=jax.ShapeDtypeStruct((n, cout, q_len), out_dtype),
        grid_spec=pltpu.PrefetchScalarGridSpec(
            num_scalar_prefetch=0,
            grid=grid,
            in_specs=in_specs,
            out_specs=pl.BlockSpec((nb, cout, q_len), lambda i: (i, 0, 0)),
        ),
        compiler_params=pltpu.CompilerParams(
            dimension_semantics=("parallel",),
        ),
    )(*args)


def _phase_image(x, stride):
    """(N,C,H,W) -> (N, C, n_phase*Hs*Ws) bf16 phase tensor + tap offsets.

    For stride 1 the phase tensor is just the zero-padded image; for stride 2
    it is the 4 parity-subsampled padded images, so every 3x3 tap becomes a
    unit-stride shifted window (a static slice start inside the kernel).
    Output rows are laid out with row stride Ws ("garbage columns" past Wo).
    """
    n, c, h, w = x.shape
    if stride == 1:
        xp = jnp.pad(x, ((0, 0), (0, 0), (1, 2), (1, 1)))
        hs, ws = h + 3, w + 2
        phases = xp[:, :, None, :, :]                       # (N,C,1,Hs,Ws)
        ho, wo = h, w
        offsets = [kh * ws + kw for kh in range(3) for kw in range(3)]
    elif stride == 2:
        assert h % 2 == 0 and w % 2 == 0
        xp = jnp.pad(x, ((0, 0), (0, 0), (1, 3), (1, 1)))
        hs, ws = h // 2 + 2, w // 2 + 1
        phases = jnp.stack(
            [xp[:, :, a::2, b::2] for a in (0, 1) for b in (0, 1)], axis=2)
        ho, wo = h // 2, w // 2
        lp = hs * ws
        offsets = [((kh % 2) * 2 + (kw % 2)) * lp + (kh // 2) * ws + (kw // 2)
                   for kh in range(3) for kw in range(3)]
    else:
        raise NotImplementedError("only stride 1 / 2 used by the CIFAR ResNet")
    n_phase = phases.shape[2]
    flat = phases.reshape(n, c, n_phase * hs * ws).astype(jnp.bfloat16)
    return flat, tuple(offsets), ho, wo, ws


def _fold_bn(gamma, beta, mean, var, eps):
    scale = gamma / jnp.sqrt(var + eps)
    return scale, beta - mean * scale


def _conv_weight_taps(w, scale):
    """(Cout,Cin,3,3) OIHW -> (9, Cout, Cin) bf16 with BN scale folded in."""
    cout, cin = w.shape[0], w.shape[1]
    taps = w.transpose(2, 3, 0, 1).reshape(9, cout, cin)   # tap index = kh*3+kw
    return (taps * scale[None, :, None]).astype(jnp.bfloat16)


def basic_block_forward(x, params, *, stride=1, option="A", eps=1e-5):
    """Forward pass of the CIFAR ResNet BasicBlock (NCHW in / NCHW out)."""
    n, c_in, h, w = x.shape
    planes = params["w1"].shape[0]

    s1, b1 = _fold_bn(params["g1"], params["b1"], params["m1"], params["v1"], eps)
    s2, b2 = _fold_bn(params["g2"], params["b2"], params["m2"], params["v2"], eps)
    w1_taps = _conv_weight_taps(params["w1"], s1)
    w2_taps = _conv_weight_taps(params["w2"], s2)
    b1c = b1.reshape(planes, 1).astype(jnp.float32)
    b2c = b2.reshape(planes, 1).astype(jnp.float32)

    # --- conv1 (3x3, stride s, pad 1) + bn1 + relu ------------------------
    x_ph, offs1, ho, wo, wg1 = _phase_image(x, stride)
    q1 = ho * wg1
    h1 = _conv3x3_bn_act(x_ph, offs1, q1, w1_taps, b1c,
                         apply_relu=True, out_dtype=jnp.bfloat16)
    h1_img = h1.reshape(n, planes, ho, wg1)[:, :, :, :wo]   # (N, planes, Ho, Wo)

    # --- shortcut (LambdaLayer, option 'A'): channels left unpadded -------
    if stride != 1 or c_in != planes:
        if option != "A":
            raise NotImplementedError("only option='A' shortcut implemented")
        assert c_in + 2 * (planes // 4) == planes
        sc_img = x[:, :, ::2, ::2]          # spatial subsample (as in the Lambda)
        sc_row0 = planes // 4               # channel offset, embedded in-kernel
    else:
        sc_img = x
        sc_row0 = 0
    assert sc_img.shape[2:] == (ho, wo), sc_img.shape

    # --- conv2 (3x3, stride 1, pad 1) + bn2 + shortcut add + relu ---------
    h1_ph, offs2, ho2, wo2, wg2 = _phase_image(h1_img, 1)
    q2 = ho2 * wg2
    sc_g = jnp.pad(sc_img, ((0, 0), (0, 0), (0, 0), (0, wg2 - wo)))
    sc_g = sc_g.reshape(n, sc_img.shape[1], q2).astype(jnp.bfloat16)
    out_g = _conv3x3_bn_act(h1_ph, offs2, q2, w2_taps, b2c,
                            shortcut=sc_g, sc_row0=sc_row0,
                            apply_relu=True, out_dtype=jnp.float32)
    return out_g.reshape(n, planes, ho2, wg2)[:, :, :, :wo2]


def basic_block_ref(x, params, *, stride, eps=1e-5):
    """Pure-JAX reference (lax.conv + explicit BN) for correctness checking."""
    prec = lax.Precision.HIGHEST

    def conv(v, w, s):
        return lax.conv_general_dilated(
            v, w, (s, s), ((1, 1), (1, 1)),
            dimension_numbers=("NCHW", "OIHW", "NCHW"), precision=prec)

    def bn(v, g, b, m, var):
        return (g[None, :, None, None] * (v - m[None, :, None, None])
                / jnp.sqrt(var[None, :, None, None] + eps) + b[None, :, None, None])

    planes = params["w1"].shape[0]
    hmid = jax.nn.relu(bn(conv(x, params["w1"], stride),
                          params["g1"], params["b1"], params["m1"], params["v1"]))
    h2 = bn(conv(hmid, params["w2"], 1),
            params["g2"], params["b2"], params["m2"], params["v2"])
    if stride != 1 or x.shape[1] != planes:
        pad = planes // 4
        sc = jnp.pad(x[:, :, ::2, ::2],
                     ((0, 0), (pad, pad), (0, 0), (0, 0)))
    else:
        sc = x
    return jax.nn.relu(h2 + sc)


def _make_params(key, in_planes, planes):
    ks = jax.random.split(key, 10)
    return {
        "w1": 0.2 * jax.random.normal(ks[0], (planes, in_planes, 3, 3), jnp.float32),
        "g1": 1.0 + 0.1 * jax.random.normal(ks[1], (planes,), jnp.float32),
        "b1": 0.1 * jax.random.normal(ks[2], (planes,), jnp.float32),
        "m1": 0.1 * jax.random.normal(ks[3], (planes,), jnp.float32),
        "v1": jax.random.uniform(ks[4], (planes,), jnp.float32, 0.5, 1.5),
        "w2": 0.2 * jax.random.normal(ks[5], (planes, planes, 3, 3), jnp.float32),
        "g2": 1.0 + 0.1 * jax.random.normal(ks[6], (planes,), jnp.float32),
        "b2": 0.1 * jax.random.normal(ks[7], (planes,), jnp.float32),
        "m2": 0.1 * jax.random.normal(ks[8], (planes,), jnp.float32),
        "v2": jax.random.uniform(ks[9], (planes,), jnp.float32, 0.5, 1.5),
    }


def _check(x, params, stride):
    out = jax.block_until_ready(
        basic_block_forward(x, params, stride=stride, option="A"))
    ref = basic_block_ref(x, params, stride=stride)
    planes = params["w1"].shape[0]
    n, _, h, w = x.shape
    assert out.shape == (n, planes, h // stride, w // stride), out.shape
    max_ref = float(jnp.max(jnp.abs(ref)))
    max_err = float(jnp.max(jnp.abs(out - ref)))
    # bf16 MXU operands vs. a full-f32 HIGHEST-precision reference:
    # allow ~3% of the output scale.
    tol = 3e-2 * max_ref + 2e-2
    assert max_err <= tol, f"stride={stride}: max_err={max_err} tol={tol}"


if __name__ == "__main__":
    key = jax.random.PRNGKey(0)
    k_ds, k_id, kx1, kx2 = jax.random.split(key, 4)

    # Downsampling BasicBlock (16 -> 32 planes, stride 2, option-'A' shortcut),
    # i.e. the CIFAR ResNet layer2 transition at small batch / spatial size.
    N, IN_PLANES, PLANES, H, W = 2, 16, 32, 16, 16
    x_ds = jax.random.normal(kx1, (N, IN_PLANES, H, W), jnp.float32)
    _check(x_ds, _make_params(k_ds, IN_PLANES, PLANES), stride=2)

    # Identity BasicBlock (16 -> 16 planes, stride 1) -- the common case.
    x_id = jax.random.normal(kx2, (2, 16, 16, 16), jnp.float32)
    _check(x_id, _make_params(k_id, 16, 16), stride=1)

    print("KERNEL_OK")
</pallas_src>

<mosaic_0001>
module attributes {stable_mosaic.version = 11 : i64} {
  func.func @_conv3x3_kernel(%arg0: i32, %arg1: memref<9x32x16xbf16, #tpu.memory_space<vmem>>, %arg2: memref<32x1xf32, #tpu.memory_space<vmem>>, %arg3: memref<1x16x360xbf16, #tpu.memory_space<vmem>>, %arg4: memref<1x32x72xbf16, #tpu.memory_space<vmem>>) attributes {dimension_semantics = [#tpu.dimension_semantics<parallel>], iteration_bounds = array<i64: 2>, scalar_prefetch = 0 : i64, scratch_operands = 0 : i64, tpu.core_type = #tpu.core_type<tc>, window_params = [{pipeline_mode = #tpu.pipeline_mode<synchronous>, transform_indices = @transform_0, window_bounds = array<i64: 9, 32, 16>}, {pipeline_mode = #tpu.pipeline_mode<synchronous>, transform_indices = @transform_1, window_bounds = array<i64: 32, 1>}, {transform_indices = @transform_2, window_bounds = array<i64: 1, 16, 360>}, {transform_indices = @transform_3, window_bounds = array<i64: 1, 32, 72>}]} {
    %c0 = arith.constant 0 : index
    %c0_0 = arith.constant 0 : index
    %c0_1 = arith.constant 0 : index
    %0 = vector.load %arg3[%c0, %c0_0, %c0_1] : memref<1x16x360xbf16, #tpu.memory_space<vmem>>, vector<1x16x72xbf16>
    %1 = vector.shape_cast %0 : vector<1x16x72xbf16> to vector<16x72xbf16>
    %c0_2 = arith.constant 0 : index
    %c0_3 = arith.constant 0 : index
    %c0_4 = arith.constant 0 : index
    %2 = vector.load %arg1[%c0_2, %c0_3, %c0_4] : memref<9x32x16xbf16, #tpu.memory_space<vmem>>, vector<1x32x16xbf16>
    %3 = vector.shape_cast %2 : vector<1x32x16xbf16> to vector<32x16xbf16>
    %cst = arith.constant dense<0.000000e+00> : vector<32x72xf32>
    %4 = tpu.matmul %3, %1, %cst {dimension_numbers = #tpu.dot_dimension_numbers<[1], [0], [0], [1], [0, 0, 1, 1], [], []>} : vector<32x16xbf16>, vector<16x72xbf16>, vector<32x72xf32> -> vector<32x72xf32>
    %c0_5 = arith.constant 0 : index
    %c0_6 = arith.constant 0 : index
    %c90 = arith.constant 90 : index
    %5 = vector.load %arg3[%c0_5, %c0_6, %c90] : memref<1x16x360xbf16, #tpu.memory_space<vmem>>, vector<1x16x72xbf16>
    %6 = vector.shape_cast %5 : vector<1x16x72xbf16> to vector<16x72xbf16>
    %c1 = arith.constant 1 : index
    %c0_7 = arith.constant 0 : index
    %c0_8 = arith.constant 0 : index
    %7 = vector.load %arg1[%c1, %c0_7, %c0_8] : memref<9x32x16xbf16, #tpu.memory_space<vmem>>, vector<1x32x16xbf16>
    %8 = vector.shape_cast %7 : vector<1x32x16xbf16> to vector<32x16xbf16>
    %cst_9 = arith.constant dense<0.000000e+00> : vector<32x72xf32>
    %9 = tpu.matmul %8, %6, %cst_9 {dimension_numbers = #tpu.dot_dimension_numbers<[1], [0], [0], [1], [0, 0, 1, 1], [], []>} : vector<32x16xbf16>, vector<16x72xbf16>, vector<32x72xf32> -> vector<32x72xf32>
    %10 = arith.addf %4, %9 : vector<32x72xf32>
    %c0_10 = arith.constant 0 : index
    %c0_11 = arith.constant 0 : index
    %c1_12 = arith.constant 1 : index
    %11 = vector.load %arg3[%c0_10, %c0_11, %c1_12] : memref<1x16x360xbf16, #tpu.memory_space<vmem>>, vector<1x16x72xbf16>
    %12 = vector.shape_cast %11 : vector<1x16x72xbf16> to vector<16x72xbf16>
    %c2 = arith.constant 2 : index
    %c0_13 = arith.constant 0 : index
    %c0_14 = arith.constant 0 : index
    %13 = vector.load %arg1[%c2, %c0_13, %c0_14] : memref<9x32x16xbf16, #tpu.memory_space<vmem>>, vector<1x32x16xbf16>
    %14 = vector.shape_cast %13 : vector<1x32x16xbf16> to vector<32x16xbf16>
    %cst_15 = arith.constant dense<0.000000e+00> : vector<32x72xf32>
    %15 = tpu.matmul %14, %12, %cst_15 {dimension_numbers = #tpu.dot_dimension_numbers<[1], [0], [0], [1], [0, 0, 1, 1], [], []>} : vector<32x16xbf16>, vector<16x72xbf16>, vector<32x72xf32> -> vector<32x72xf32>
    %16 = arith.addf %10, %15 : vector<32x72xf32>
    %c0_16 = arith.constant 0 : index
    %c0_17 = arith.constant 0 : index
    %c180 = arith.constant 180 : index
    %17 = vector.load %arg3[%c0_16, %c0_17, %c180] : memref<1x16x360xbf16, #tpu.memory_space<vmem>>, vector<1x16x72xbf16>
    %18 = vector.shape_cast %17 : vector<1x16x72xbf16> to vector<16x72xbf16>
    %c3 = arith.constant 3 : index
    %c0_18 = arith.constant 0 : index
    %c0_19 = arith.constant 0 : index
    %19 = vector.load %arg1[%c3, %c0_18, %c0_19] : memref<9x32x16xbf16, #tpu.memory_space<vmem>>, vector<1x32x16xbf16>
    %20 = vector.shape_cast %19 : vector<1x32x16xbf16> to vector<32x16xbf16>
    %cst_20 = arith.constant dense<0.000000e+00> : vector<32x72xf32>
    %21 = tpu.matmul %20, %18, %cst_20 {dimension_numbers = #tpu.dot_dimension_numbers<[1], [0], [0], [1], [0, 0, 1, 1], [], []>} : vector<32x16xbf16>, vector<16x72xbf16>, vector<32x72xf32> -> vector<32x72xf32>
    %22 = arith.addf %16, %21 : vector<32x72xf32>
    %c0_21 = arith.constant 0 : index
    %c0_22 = arith.constant 0 : index
    %c270 = arith.constant 270 : index
    %23 = vector.load %arg3[%c0_21, %c0_22, %c270] : memref<1x16x360xbf16, #tpu.memory_space<vmem>>, vector<1x16x72xbf16>
    %24 = vector.shape_cast %23 : vector<1x16x72xbf16> to vector<16x72xbf16>
    %c4 = arith.constant 4 : index
    %c0_23 = arith.constant 0 : index
    %c0_24 = arith.constant 0 : index
    %25 = vector.load %arg1[%c4, %c0_23, %c0_24] : memref<9x32x16xbf16, #tpu.memory_space<vmem>>, vector<1x32x16xbf16>
    %26 = vector.shape_cast %25 : vector<1x32x16xbf16> to vector<32x16xbf16>
    %cst_25 = arith.constant dense<0.000000e+00> : vector<32x72xf32>
    %27 = tpu.matmul %26, %24, %cst_25 {dimension_numbers = #tpu.dot_dimension_numbers<[1], [0], [0], [1], [0, 0, 1, 1], [], []>} : vector<32x16xbf16>, vector<16x72xbf16>, vector<32x72xf32> -> vector<32x72xf32>
    %28 = arith.addf %22, %27 : vector<32x72xf32>
    %c0_26 = arith.constant 0 : index
    %c0_27 = arith.constant 0 : index
    %c181 = arith.constant 181 : index
    %29 = vector.load %arg3[%c0_26, %c0_27, %c181] : memref<1x16x360xbf16, #tpu.memory_space<vmem>>, vector<1x16x72xbf16>
    %30 = vector.shape_cast %29 : vector<1x16x72xbf16> to vector<16x72xbf16>
    %c5 = arith.constant 5 : index
    %c0_28 = arith.constant 0 : index
    %c0_29 = arith.constant 0 : index
    %31 = vector.load %arg1[%c5, %c0_28, %c0_29] : memref<9x32x16xbf16, #tpu.memory_space<vmem>>, vector<1x32x16xbf16>
    %32 = vector.shape_cast %31 : vector<1x32x16xbf16> to vector<32x16xbf16>
    %cst_30 = arith.constant dense<0.000000e+00> : vector<32x72xf32>
    %33 = tpu.matmul %32, %30, %cst_30 {dimension_numbers = #tpu.dot_dimension_numbers<[1], [0], [0], [1], [0, 0, 1, 1], [], []>} : vector<32x16xbf16>, vector<16x72xbf16>, vector<32x72xf32> -> vector<32x72xf32>
    %34 = arith.addf %28, %33 : vector<32x72xf32>
    %c0_31 = arith.constant 0 : index
    %c0_32 = arith.constant 0 : index
    %c9 = arith.constant 9 : index
    %35 = vector.load %arg3[%c0_31, %c0_32, %c9] : memref<1x16x360xbf16, #tpu.memory_space<vmem>>, vector<1x16x72xbf16>
    %36 = vector.shape_cast %35 : vector<1x16x72xbf16> to vector<16x72xbf16>
    %c6 = arith.constant 6 : index
    %c0_33 = arith.constant 0 : index
    %c0_34 = arith.constant 0 : index
    %37 = vector.load %arg1[%c6, %c0_33, %c0_34] : memref<9x32x16xbf16, #tpu.memory_space<vmem>>, vector<1x32x16xbf16>
    %38 = vector.shape_cast %37 : vector<1x32x16xbf16> to vector<32x16xbf16>
    %cst_35 = arith.constant dense<0.000000e+00> : vector<32x72xf32>
    %39 = tpu.matmul %38, %36, %cst_35 {dimension_numbers = #tpu.dot_dimension_numbers<[1], [0], [0], [1], [0, 0, 1, 1], [], []>} : vector<32x16xbf16>, vector<16x72xbf16>, vector<32x72xf32> -> vector<32x72xf32>
    %40 = arith.addf %34, %39 : vector<32x72xf32>
    %c0_36 = arith.constant 0 : index
    %c0_37 = arith.constant 0 : index
    %c99 = arith.constant 99 : index
    %41 = vector.load %arg3[%c0_36, %c0_37, %c99] : memref<1x16x360xbf16, #tpu.memory_space<vmem>>, vector<1x16x72xbf16>
    %42 = vector.shape_cast %41 : vector<1x16x72xbf16> to vector<16x72xbf16>
    %c7 = arith.constant 7 : index
    %c0_38 = arith.constant 0 : index
    %c0_39 = arith.constant 0 : index
    %43 = vector.load %arg1[%c7, %c0_38, %c0_39] : memref<9x32x16xbf16, #tpu.memory_space<vmem>>, vector<1x32x16xbf16>
    %44 = vector.shape_cast %43 : vector<1x32x16xbf16> to vector<32x16xbf16>
    %cst_40 = arith.constant dense<0.000000e+00> : vector<32x72xf32>
    %45 = tpu.matmul %44, %42, %cst_40 {dimension_numbers = #tpu.dot_dimension_numbers<[1], [0], [0], [1], [0, 0, 1, 1], [], []>} : vector<32x16xbf16>, vector<16x72xbf16>, vector<32x72xf32> -> vector<32x72xf32>
    %46 = arith.addf %40, %45 : vector<32x72xf32>
    %c0_41 = arith.constant 0 : index
    %c0_42 = arith.constant 0 : index
    %c10 = arith.constant 10 : index
    %47 = vector.load %arg3[%c0_41, %c0_42, %c10] : memref<1x16x360xbf16, #tpu.memory_space<vmem>>, vector<1x16x72xbf16>
    %48 = vector.shape_cast %47 : vector<1x16x72xbf16> to vector<16x72xbf16>
    %c8 = arith.constant 8 : index
    %c0_43 = arith.constant 0 : index
    %c0_44 = arith.constant 0 : index
    %49 = vector.load %arg1[%c8, %c0_43, %c0_44] : memref<9x32x16xbf16, #tpu.memory_space<vmem>>, vector<1x32x16xbf16>
    %50 = vector.shape_cast %49 : vector<1x32x16xbf16> to vector<32x16xbf16>
    %cst_45 = arith.constant dense<0.000000e+00> : vector<32x72xf32>
    %51 = tpu.matmul %50, %48, %cst_45 {dimension_numbers = #tpu.dot_dimension_numbers<[1], [0], [0], [1], [0, 0, 1, 1], [], []>} : vector<32x16xbf16>, vector<16x72xbf16>, vector<32x72xf32> -> vector<32x72xf32>
    %52 = arith.addf %46, %51 : vector<32x72xf32>
    %c0_46 = arith.constant 0 : index
    %c0_47 = arith.constant 0 : index
    %53 = vector.load %arg2[%c0_46, %c0_47] : memref<32x1xf32, #tpu.memory_space<vmem>>, vector<32x1xf32>
    %54 = vector.broadcast %53 : vector<32x1xf32> to vector<32x72xf32>
    %55 = arith.addf %52, %54 : vector<32x72xf32>
    %cst_48 = arith.constant 0.000000e+00 : f32
    %56 = vector.broadcast %cst_48 : f32 to vector<32x72xf32>
    %57 = arith.maximumf %55, %56 : vector<32x72xf32>
    %58 = arith.truncf %57 : vector<32x72xf32> to vector<32x72xbf16>
    %c0_49 = arith.constant 0 : index
    %c0_50 = arith.constant 0 : index
    %c0_51 = arith.constant 0 : index
    %59 = vector.load %arg4[%c0_49, %c0_50, %c0_51] : memref<1x32x72xbf16, #tpu.memory_space<vmem>>, vector<1x32x72xbf16>
    %60 = vector.shape_cast %59 : vector<1x32x72xbf16> to vector<32x72xbf16>
    %61 = vector.shape_cast %58 : vector<32x72xbf16> to vector<1x32x72xbf16>
    tpu.vector_store %arg4[%c0_49, %c0_50, %c0_51], %61 {strides = array<i32>} : memref<1x32x72xbf16, #tpu.memory_space<vmem>>, vector<1x32x72xbf16>,
    return
  }
  func.func @transform_0(%arg0: i32) -> (i32, i32, i32) {
    %c0_i32 = arith.constant 0 : i32
    %c0_i32_0 = arith.constant 0 : i32
    %c0_i32_1 = arith.constant 0 : i32
    %c0_i32_2 = arith.constant 0 : i32
    return %c0_i32, %c0_i32_0, %c0_i32_1 : i32, i32, i32
  }
  func.func @transform_1(%arg0: i32) -> (i32, i32) {
    %c0_i32 = arith.constant 0 : i32
    %c0_i32_0 = arith.constant 0 : i32
    %c0_i32_1 = arith.constant 0 : i32
    return %c0_i32, %c0_i32_0 : i32, i32
  }
  func.func @transform_2(%arg0: i32) -> (i32, i32, i32) {
    %c0_i32 = arith.constant 0 : i32
    %c0_i32_0 = arith.constant 0 : i32
    %c0_i32_1 = arith.constant 0 : i32
    return %arg0, %c0_i32, %c0_i32_0 : i32, i32, i32
  }
  func.func @transform_3(%arg0: i32) -> (i32, i32, i32) {
    %c0_i32 = arith.constant 0 : i32
    %c0_i32_0 = arith.constant 0 : i32
    %c0_i32_1 = arith.constant 0 : i32
    return %arg0, %c0_i32, %c0_i32_0 : i32, i32, i32
  }
}

</mosaic_0001>

<bundles_post_ra>
// kernel: tpu_custom_call.1
= control target key start
LH: loop header
LB: loop body
LE: loop exit
PB: predicated region body
PF: predicated region fallthrough
CT: control target
= control target key end

     0   :  { %8 = vsyncpa [#allocation3], 0  ;;  %s1595_s0 = inlined_call_operand.vmem [shape: bf16[9,32,16], index: 0, kind: input, shape index: {}]   ;;  %s1596_s1 = inlined_call_operand.vmem [shape: f32[32,1], index: 1, kind: input, shape index: {}]   ;;  %s1597_s2 = inlined_call_operand.vmem [shape: bf16[2,16,360], index: 2, kind: input, shape index: {}]   ;;  %s1598_s3 = inlined_call_operand.hbm [shape: bf16[2,32,72], index: 3, kind: output, shape index: {}]  }
   0x1   :  { %10 = vsyncpa [#allocation3 + $0x1], 0  ;;  %s1400_s12 = smov 0   ;;  %s1402_s13 = smov 0  }
   0x2   :  { %s1404_s14 = smov 0   ;;  %s1406_s15 = smov 0  }
   0x3 LB: > { %s1421_s16 = sadd.s32 4294967295, %s1366_s15   ;;  %s1021_s17 = sadd.s32 4294967294, %s1366_s15   ;;  %s1366_s15 = sphi %s1406_s15, %s1604_s15   ;;  %s1362_s14 = sphi %s1404_s14, %s1603_s14   ;;  %s1358_s13 = sphi %s1402_s13, %s1602_s13   ;;  %s1354_s12 = sphi %s1400_s12, %s1601_s12  }
   0x4   : > { %s1425_s18 = sadd.s32 1, %s1366_s15   ;;  %s91_s19 = sadd.s32 1, %s1362_s14 }
   0x5   : > { %s88_s20 = ssub.s32 %s1366_s15, %s1425_s18  ;;  %p101_p0 = scmp.ne.s32.totalorder %s1362_s14, %s1358_s13 }
   0x6   : > { %p89_p1 = scmp.eq.s32.totalorder %s88_s20, 0  ;;  %p102_p2 = scmp.eq.s32.totalorder %s1421_s16, 1 }
   0x7   : > { %p107_p3 = scmp.ne.s32.totalorder %s1358_s13, %s1354_s12  ;;  %p108_p4 = scmp.eq.s32.totalorder %s1021_s17, 1 }
   0x8   : > { %s1436_s21 = scalar_select %p89_p1, %s1362_s14, %s91_s19  }
   0x9   : > { %p1438_p5 = por %p102_p2, %p101_p0  ;;  %p1442_p6 = por %p108_p4, %p107_p3 }
   0xa   : > { %p1024_p7 = scmp.ge.s32.totalorder %s1366_s15, 1  ;;  %p140_p8 = scmp.lt.s32.totalorder %s1366_s15, 3 }
   0xc   : > { %p141_p9 = pnand %p1024_p7, %p140_p8 }
   0xd   : > { %p164_p10 = scmp.lt.s32.totalorder (!%p141_p9), %s1421_s16, 1  ;;  %vm208_vm0 = vcmask (!%p141_p9), 130048   ;;  %v1286_v0 = vld [vmem:[%s1595_s0 + $0x40] sm:$0xff] (!%p141_p9)   ;;  %v1288_v1 = vld [vmem:[%s1595_s0 + $0x10] sm:$0xff] (!%p141_p9)   ;;  %s1368_s6 = smov (!%p141_p9), 114   ;;  %v893_v7 = vld [vmem:[%s1596_s1 + $0x8] sm:$0xff] (!%p141_p9) }
   0xe   : > { %144 = sbr.rel (%p141_p9) target bundleno = 432 (0x1b0), region = 32  ;;  %1167 = vmatprep.mubr.msk.bf16.mxu0 (!%p141_p9), %vm208_vm0, %v1286_v0  ;;  %1143 = vmatprep.mubr.msk.bf16.mxu1 (!%p141_p9), %vm208_vm0, %v1288_v1  ;;  %s1369_s7 = smov (!%p141_p9), 38   ;;  %v892_v8 = vld [vmem:[%s1596_s1] sm:$0xff] (!%p141_p9)  ;;  %v1376_v9 = vmov (!%p141_p9), 0   ;;  %v894_v10 = vld [vmem:[%s1596_s1 + $0x10] sm:$0xff] (!%p141_p9)  ;;  %v895_v11 = vld [vmem:[%s1596_s1 + $0x18] sm:$0xff] (!%p141_p9) }
   0xf   : > { %s1370_s8 = smov (!%p141_p9), 75   ;;  %s1371_s9 = smov (!%p141_p9), 119   ;;  %1279 = vset.pattern.permute.xlu1 (!%p141_p9), %v1376_v9  ;;  %1278 = vset.pattern.permute.xlu0 (!%p141_p9), %v1376_v9  ;;  %v1287_v14 = vld [vmem:[%s1595_s0 + $0x48] sm:$0xff] (!%p141_p9)   ;;  %vm205_vm1 = vcmask (!%p141_p9), 310272   ;;  %v1290_v16 = vld [vmem:[%s1595_s0 + $0x50] sm:$0xff] (!%p141_p9)   ;;  %v1289_v19 = vld [vmem:[%s1595_s0 + $0x18] sm:$0xff] (!%p141_p9)  }
  0x10   : > { %s1372_s10 = smov (!%p141_p9), 29   ;;  %s1373_s11 = smov (!%p141_p9), 127   ;;  %v1292_v20 = vld [vmem:[%s1595_s0] sm:$0xff] (!%p141_p9)   ;;  %v1291_v23 = vld [vmem:[%s1595_s0 + $0x58] sm:$0xff] (!%p141_p9)   ;;  %vm753_vm2 = vcmask (!%p141_p9), 236544   ;;  %v1293_v28 = vld [vmem:[%s1595_s0 + $0x8] sm:$0xff] (!%p141_p9)  }
  0x11   : > { %s1374_s17 = smov (!%p141_p9), 76   ;;  %s1375_s19 = smov (!%p141_p9), 118   ;;  %v1294_v26 = vld [vmem:[%s1595_s0 + $0x60] sm:$0xff] (!%p141_p9)   ;;  %v1295_v31 = vld [vmem:[%s1595_s0 + $0x68] sm:$0xff] (!%p141_p9)   ;;  %v1298_v32 = vld [vmem:[%s1595_s0 + $0x70] sm:$0xff] (!%p141_p9)   ;;  %vm940_vm3 = vcmask (!%p141_p9), 584704  }
  0x12   : > { %v1296_v29 = vld [vmem:[%s1595_s0 + $0x20] sm:$0xff] (!%p141_p9)   ;;  %v1297_v34 = vld [vmem:[%s1595_s0 + $0x28] sm:$0xff] (!%p141_p9)   ;;  %v1300_v35 = vld [vmem:[%s1595_s0 + $0x30] sm:$0xff] (!%p141_p9)   ;;  %s161_s27 = sand.u32 (!%p141_p9), 1, %s1358_s13  }
  0x13   : > { %v1299_v36 = vld [vmem:[%s1595_s0 + $0x78] sm:$0xff] (!%p141_p9)   ;;  %v1302_v37 = vld [vmem:[%s1595_s0 + $0x80] sm:$0xff] (!%p141_p9)   ;;  %v1303_v39 = vld [vmem:[%s1595_s0 + $0x88] sm:$0xff] (!%p141_p9)   ;;  %s1025_s28 = sshll.u32 (!%p141_p9), %s161_s27, 4 }
  0x14   : > { %v1301_v38 = vld [vmem:[%s1595_s0 + $0x38] sm:$0xff] (!%p141_p9)   ;;  %s163_s30 = scalar_lea.vmem (!%p141_p9), [#allocation2], %s1025_s28 }
  0x15   : > { %s165_s26 = scalar_select %p164_p10, %s1421_s16, 1 }
  0x16   : > { %s959_s4 = sshll.u32 %s163_s30, 4  ;;  %s1547_s4 = int_to_ptr.vmem [resolvable:$true] %s959_s4 }
  0x17   : > { %s1227_s29 = smul.u32 24, %s165_s26 }
  0x19   : > { %s168_s5 = scalar_lea.vmem %s1597_s2, %s1227_s29  ;;  %s1113_s29 = sshll.u32 %s1421_s16, 8 }
  0x1a   : > { %v1280_v2 = vld [vmem:[%s168_s5 + $0x8] ss:$12 sps:$4 sm:$0xff]   ;;  %v1281_v3 = vld [vmem:[%s168_s5 + $0x4] ss:$12 sps:$4 sm:$0xff]   ;;  %v1283_v4 = vld [vmem:[%s168_s5] ss:$12 sps:$4 sm:$0xff]  }
  0x1b   : > { %518 = vrot.lane.b32.xlu0 %v1280_v2, %s1368_s6  ;;  %203 = vrot.lane.b32.xlu1 %v1281_v3, %s1369_s7  ;;  %v1284_v5 = vld [vmem:[%s168_s5 + $0x4] ss:$12 sps:$4 sm:$0xff]   ;;  %v1285_v6 = vld [vmem:[%s168_s5] ss:$12 sps:$4 sm:$0xff]   ;;  %s1554_s16 = scalar_lea.sflag [#allocation3], %s161_s27 }
  0x1f   : > { %201 = vrot.lane.b32.xlu0 %v1283_v4, %s1369_s7  ;;  %595 = vrot.lane.b32.xlu1 %v1284_v5, %s1370_s8  ;;  %s1545_s7 = scalar_lea.hbm %s1598_s3, %s1113_s29  ;;  %s1304_s8 = scalar_lea.vmem %s1547_s4, 256 }
  0x20   : > { %p1305_p11 = scmp.ne.s32.totalorder %s1547_s4, %s1304_s8 }
  0x22   : > { %p1306_p12 = pnand %p1305_p11, %p1438_p5 }
  0x23   : > { %672 = vrot.lane.b32.xlu0 %v1285_v6, %s1371_s9  ;;  %749 = vrot.lane.b32.xlu1 %v1283_v4, %s1372_s10  ;;  %s1377_s9 = smov [#allocation2]  }
  0x24   : > { %p1307_p13 = pneg %p1306_p12 }
  0x27   : > { %751 = vrot.lane.b32.xlu0 %v1281_v3, %s1372_s10  ;;  %350 = vrot.lane.b32.xlu1 %v1285_v6, %s1373_s11  ;;  %s1308_s10 = sshll.u32 %s1377_s9, 4  ;;  %s1309_s10 = int_to_ptr.vmem [resolvable:$false] %s1308_s10 }
  0x28   : > { %s1310_s11 = scalar_lea.vmem %s1309_s10, 512  ;;  %p1311_p0 = scmp.lt.s32.totalorder %s1547_s4, %s1309_s10 }
  0x29   : > { %p1312_p1 = scmp.lt.s32.totalorder %s1310_s11, %s1304_s8 }
  0x2b   : > { %434 = vrot.lane.b32.xlu0 %v1284_v5, %s1374_s17  ;;  %830 = vrot.lane.b32.xlu1 %v1285_v6, %s1375_s19  ;;  %p1313_p2 = por %p1312_p1, %p1311_p0 }
  0x2d   : > { %p1314_p3 = pnand %p1313_p2, %p1307_p13 }
  0x2f   : > { %903 = vperm.xlu1 %1279, %v893_v7   ;;  %898 = vperm.xlu0 %1278, %v892_v8  }
  0x33   : > { %908 = vperm.xlu1 %1279, %v894_v10   ;;  %913 = vperm.xlu0 %1278, %v895_v11  }
  0x8d   : > { %v519_v12 = vpop.permute.xlu0 %518  ;;  %v204_v13 = vpop.permute.xlu1 %203 }
  0x8e   : > { %1165 = vmatprep.subr.bf16.mxu0 %v519_v12 }
  0x8f   : > { %1166 = vmatpush3.bf16.msra.mxu0 %v519_v12 }
  0x91   : > { %v202_v15 = vpop.permute.xlu0 %201  ;;  %v596_v17 = vpop.permute.xlu1 %595 }
  0x92   : > { %1168 = vmatmul.mubr.msk.bf16.vlgmr.msra.gmra.mrb[0].mxu0 %vm208_vm0, %v1287_v14  ;;  %v206_v18 = vsel %vm205_vm1, %v202_v15, %v204_v13  ;;  %1171 = vmatprep.subr.bf16.mxu0 %v596_v17 }
  0x93   : > { %1141 = vmatprep.subr.bf16.mxu1 %v206_v18  ;;  %1172 = vmatpush3.bf16.msra.mxu0 %v596_v17 }
  0x94   : > { %1142 = vmatpush3.bf16.msra.mxu1 %v206_v18  ;;  %1173 = vmatprep.mubr.msk.bf16.mxu0 %vm208_vm0, %v1290_v16 }
  0x95   : > { %v673_v21 = vpop.permute.xlu0 %672  ;;  %1147 = vmatprep.subr.bf16.mxu1 %v1285_v6  ;;  %v750_v22 = vpop.permute.xlu1 %749 }
  0x96   : > { %1177 = vmatprep.subr.bf16.mxu0 %v673_v21 }
  0x97   : > { %1144 = vmatmul.mubr.msk.bf16.vlgmr.msra.gmra.mrb[0].mxu1 %vm208_vm0, %v1289_v19 }
  0x98   : > { %1148 = vmatpush3.bf16.msra.mxu1 %v1285_v6  ;;  %1149 = vmatprep.mubr.msk.bf16.mxu1 %vm208_vm0, %v1292_v20 }
  0x99   : > { %v752_v24 = vpop.permute.xlu0 %751  ;;  %v351_v25 = vpop.permute.xlu1 %350 }
  0x9a   : > { %1153 = vmatprep.subr.bf16.mxu1 %v351_v25  ;;  %v754_v27 = vsel %vm753_vm2, %v750_v22, %v752_v24 }
  0x9d   : > { %v435_v30 = vpop.permute.xlu0 %434  ;;  %v831_v33 = vpop.permute.xlu1 %830 }
  0x9e   : > { %1174 = vmatmul.mubr.msk.bf16.vlgmr.msra.gmra.mrb[0].mxu0 %vm208_vm0, %v1291_v23 }
  0x9f   : > { %1178 = vmatpush3.bf16.msra.mxu0 %v673_v21  ;;  %1179 = vmatprep.mubr.msk.bf16.mxu0 %vm208_vm0, %v1294_v26 }
  0xa0   : > { %1183 = vmatprep.subr.bf16.mxu0 %v754_v27 }
  0xa3   : > { %1150 = vmatmul.mubr.msk.bf16.vlgmr.msra.gmra.mrb[0].mxu1 %vm208_vm0, %v1293_v28 }
  0xa4   : > { %1154 = vmatpush3.bf16.msra.mxu1 %v351_v25  ;;  %1155 = vmatprep.mubr.msk.bf16.mxu1 %vm208_vm0, %v1296_v29 }
  0xa5   : > { %1159 = vmatprep.subr.bf16.mxu1 %v435_v30 }
  0xaa   : > { %1180 = vmatmul.mubr.msk.bf16.vlgmr.msra.gmra.mrb[0].mxu0 %vm208_vm0, %v1295_v31 }
  0xab   : > { %1184 = vmatpush3.bf16.msra.mxu0 %v754_v27  ;;  %1185 = vmatprep.mubr.msk.bf16.mxu0 %vm208_vm0, %v1298_v32 }
  0xac   : > { %1189 = vmatprep.subr.bf16.mxu0 %v831_v33 }
  0xae   : > { %v904_v42 = vpop.permute.xlu1 %903  ;;  %v899_v45 = vpop.permute.xlu0 %898 }
  0xaf   : > { %1156 = vmatmul.mubr.msk.bf16.vlgmr.msra.gmra.mrb[0].mxu1 %vm208_vm0, %v1297_v34 }
  0xb0   : > { %1160 = vmatpush3.bf16.msra.mxu1 %v435_v30  ;;  %1161 = vmatprep.mubr.msk.bf16.mxu1 %vm208_vm0, %v1300_v35 }
  0xb2   : > { %v909_v47 = vpop.permute.xlu1 %908  ;;  %v914_v56 = vpop.permute.xlu0 %913 }
  0xb6   : > { %1186 = vmatmul.mubr.msk.bf16.vlgmr.msra.gmra.mrb[0].mxu0 %vm208_vm0, %v1299_v36 }
  0xb7   : > { %1190 = vmatpush3.bf16.msra.mxu0 %v831_v33  ;;  %1191 = vmatprep.mubr.msk.bf16.mxu0 %vm208_vm0, %v1302_v37 }
  0xbb   : > { %1162 = vmatmul.mubr.msk.bf16.vlgmr.msra.gmra.mrb[0].mxu1 %vm208_vm0, %v1301_v38 }
  0xc2   : > { %1192 = vmatmul.mubr.msk.bf16.vlgmr.msra.gmra.mrb[0].mxu0 %vm208_vm0, %v1303_v39 }
 0x18e   : > { %v1163_v40 = vpop.f32.mrb[0].mxu1 }
 0x18f   : > { %v477_v41 = vpop.f32.mrb[1].mxu1 }
 0x190   : > { %v1164_v43 = vpop.f32.mrb[2].mxu1 }
 0x191   : > { %v480_v44 = vpop.f32.mrb[3].mxu1 }
 0x195   : > { %v1193_v46 = vpop.f32.mrb[0].mxu0 }
 0x196   : > { %v1195_v48 = vadd.f32 %v1193_v46, %v1163_v40  ;;  %v873_v49 = vpop.f32.mrb[1].mxu0 }
 0x197   : > { %v1196_v50 = vadd.f32 %v873_v49, %v477_v41  ;;  %v1194_v51 = vpop.f32.mrb[2].mxu0 }
 0x198   : > { %v918_v52 = vadd.f32 %v1195_v48, %v909_v47  ;;  %v1197_v53 = vadd.f32 %v1194_v51, %v1164_v43  ;;  %v876_v54 = vpop.f32.mrb[3].mxu0 }
 0x199   : > { %v916_v55 = vadd.f32 %v1196_v50, %v899_v45  ;;  %v1198_v57 = vadd.f32 %v876_v54, %v480_v44 }
 0x19a   : > { %v922_v58 = vmax.f32 %v918_v52, 0.0  ;;  %v919_v59 = vadd.f32 %v1197_v53, %v914_v56 }
 0x19b   : > { %v920_v60 = vmax.f32 %v916_v55, 0.0  ;;  %v917_v61 = vadd.f32 %v1198_v57, %v904_v42 }
 0x19c   : > { %v1111_v62 = vpack.c.bf16 %v922_v58, %v922_v58  ;;  %v923_v63 = vmax.f32 %v919_v59, 0.0 }
 0x19d   : > { %v1109_v0 = vpack.c.bf16 %v920_v60, %v920_v60  ;;  %v921_v1 = vmax.f32 %v917_v61, 0.0 }
 0x19e   : > { %943 = vst.msk [vmem:[%s163_s30 + $0x8] sm:$0xf] %vm940_vm3, %v1111_v62  ;;  %v1112_v2 = vpack.c.bf16 %v923_v63, %v923_v63 }
 0x19f   : > { %941 = vst.msk [vmem:[%s163_s30] sm:$0xf] %vm940_vm3, %v1109_v0  ;;  %v1110_v3 = vpack.c.bf16 %v921_v1, %v921_v1 }
 0x1a0   : > { %944 = vst.msk [vmem:[%s163_s30 + $0xc] sm:$0xf] %vm940_vm3, %v1112_v2 }
 0x1a1   : > { %942 = vst.msk [vmem:[%s163_s30 + $0x4] sm:$0xf] %vm940_vm3, %v1110_v3 }
 0x1a2   : > { %1317 = shalt.err (!%p1314_p3)
}
 0x1a3   : > { %s1318_s17 = scalar_lea.hbm %s1545_s7, 256  ;;  %s1322_s24 = scalar_lea.hbm %s1598_s3, 512 }
 0x1a4   : > { %p1319_p4 = scmp.ne.s32.totalorder %s1545_s7, %s1318_s17  ;;  %p1323_p9 = scmp.lt.u32.totalorder %s1545_s7, %s1598_s3 }
 0x1a5   : > { %p1324_p10 = scmp.lt.u32.totalorder %s1322_s24, %s1318_s17  ;;  %p1326_p12 = scmp.lt.u32.totalorder %s1318_s17, %s1545_s7 }
 0x1a6   : > { %p1320_p7 = pnand %p1319_p4, %p1438_p5 }
 0x1a7   : > { %p1325_p11 = por %p1324_p10, %p1323_p9 }
 0x1a8   : > { %p1321_p8 = pneg %p1320_p7 }
 0x1a9   : > { %p1327_p13 = por %p1326_p12, %p1325_p11 }
 0x1ab   : > { %p1328_p0 = pnand %p1327_p13, %p1321_p8 }
 0x1ad   : > { %1331 = shalt.err (!%p1328_p0)
}
 0x1ae   : > { %s1378_s27 = smov 64   ;;  %s1379_s28 = smov 4  }
 0x1af   : > { %1228 = dma.vmem_to_hbm [thread:$0]  (%p1438_p5), %s1547_s4, 256, %s1545_s7, %s1554_s16, %s1378_s27, %s1378_s27, %s1379_s28  }
 0x1b0 PF: > { %p1234_p1 = scmp.ge.s32.totalorder %s1366_s15, 2  ;;  %s974_s29 = sand.u32 1, %s1354_s12  }
 0x1b1   : > { %s975_s30 = scalar_lea.sflag [#allocation3], %s974_s29 }
 0x1b2   : > { %p1231_p2 = pnand %p1234_p1, %p1442_p6 }
 0x1b4   : > { %1349 = dma.done.wait (!%p1231_p2), %s975_s30, 256  }
 0x1b5   : > { %1351 = vsyncadd (!%p1231_p2), %s975_s30, 4294967040  ;;  %p13_p3 = scmp.ge.s32.totalorder %s1425_s18, 4   ;;  %s1601_s12 = smov %s1358_s13 }
 0x1b6   : > { %s1602_s13 = smov %s1362_s14  ;;  %s1603_s14 = smov %s1436_s21 }
 0x1b7   : > { %s1604_s15 = smov %s1425_s18  ;;  %15 = sbr.rel (!%p13_p3) target bundleno = 3 (0x3), region = 75 }
 0x1be   :  { %980 = vsyncpa [#allocation3], 1 }
 0x1bf   :  { %982 = vsyncpa [#allocation3 + $0x1], 1 }

</bundles_post_ra>
